<compile_context>
chip_gen: v7x
topology: tpu7x:2x2x1
jax: 0.10.0
libtpu: 0.0.40
codegen_flags: <defaults>
</compile_context>

<pallas_src>
import numpy as np
import jax
import jax.numpy as jnp
from jax.experimental import pallas as pl
from jax.experimental.pallas import tpu as pltpu

_LANE = 128


# ----------------------------------------------------------------------------
# Fused kernel: mean cross-entropy + sum|alpha| + sum(w^2), single grid step,
# single lane-dense (1,128) output.
# ----------------------------------------------------------------------------
def _make_kernel(n_alpha, n_wd):
    def kernel(x_ref, y_ref, *refs):
        # refs = (alpha params..., wd params..., out_ref)
        assert len(refs) == n_alpha + n_wd + 1
        alpha_refs = refs[:n_alpha]
        wd_refs = refs[n_alpha:n_alpha + n_wd]
        out_ref = refs[-1]

        # --- cross entropy (stable logsumexp; labels via iota compare) -------
        x = x_ref[...].astype(jnp.float32)                    # (N, C)
        labels = y_ref[...]                                   # (N, 1) int32
        col_ids = jax.lax.broadcasted_iota(jnp.int32, x.shape, 1)
        tgt = jnp.sum(jnp.where(col_ids == labels, x, 0.0),
                      axis=-1, keepdims=True)                 # (N, 1)
        m = jnp.max(x, axis=-1, keepdims=True)                # (N, 1)
        lse = m + jnp.log(jnp.sum(jnp.exp(x - m), axis=-1, keepdims=True))
        ce = lse - tgt                                        # (N, 1)
        inv_n = jnp.float32(1.0 / x.shape[0])
        xel = jnp.sum(ce, axis=0, keepdims=True) * inv_n      # (1, 1)

        # --- alpha = sum_m sum |crnWeights_m|  (per-tensor partial sums) -----
        alpha = jnp.zeros((1, 1), jnp.float32)
        for r in alpha_refs:
            a = jnp.abs(r[...].astype(jnp.float32))           # (Ri, Ci)
            alpha = alpha + jnp.sum(jnp.sum(a, axis=1, keepdims=True),
                                    axis=0, keepdims=True)

        # --- wd = sum_m sum w_m^2  (per-tensor partial sums) -----------------
        wd = jnp.zeros((1, 1), jnp.float32)
        for r in wd_refs:
            w = r[...].astype(jnp.float32)                    # (Ri, Ci)
            wd = wd + jnp.sum(jnp.sum(w * w, axis=1, keepdims=True),
                              axis=0, keepdims=True)

        # --- single lane-dense output: lane0=XEL, lane1=alpha, lane2=wd ------
        lane = jax.lax.broadcasted_iota(jnp.int32, (1, _LANE), 1)
        out_ref[...] = (jnp.where(lane == 0, xel, 0.0)
                        + jnp.where(lane == 1, alpha, 0.0)
                        + jnp.where(lane == 2, wd, 0.0))
    return kernel


def _as_2d(t):
    """Lane-friendly 2D view of a parameter (free reshape, no HBM slab)."""
    flat = t.reshape(-1).astype(jnp.float32)
    n = flat.shape[0]
    if n >= _LANE and n % _LANE == 0:
        return flat.reshape(n // _LANE, _LANE)
    return flat.reshape(1, n)


def _fused_loss_call(x, y2d, alpha_tensors, wd_tensors):
    n, c = x.shape
    params = list(alpha_tensors) + list(wd_tensors)

    in_specs = [pl.BlockSpec((n, c), lambda i: (0, 0)),
                pl.BlockSpec((n, 1), lambda i: (0, 0))]
    for t in params:
        in_specs.append(pl.BlockSpec(tuple(t.shape), lambda i: (0, 0)))

    out = pl.pallas_call(
        _make_kernel(len(alpha_tensors), len(wd_tensors)),
        out_shape=jax.ShapeDtypeStruct((1, _LANE), jnp.float32),
        grid=(1,),
        in_specs=in_specs,
        out_specs=pl.BlockSpec((1, _LANE), lambda i: (0, 0)),
        compiler_params=pltpu.CompilerParams(
            dimension_semantics=("arbitrary",),
            vmem_limit_bytes=32 * 1024 * 1024),
    )(x, y2d, *params)
    return out[0, 0], out[0, 1], out[0, 2]


# ----------------------------------------------------------------------------
# CRN_Loss.forward
# ----------------------------------------------------------------------------
def crn_loss_forward(x, y, model_params, reg_strength=1e-4):
    # reg_strength is stored but unused in the PyTorch forward; kept for fidelity.
    del reg_strength
    n, c = x.shape
    crn_modules = model_params["crn"]

    alpha_tensors = [_as_2d(m["crnWeights"]) for m in crn_modules]
    wd_tensors = ([_as_2d(m["weight"]) for m in crn_modules]
                  + [_as_2d(w) for w in model_params["other_weights"]])
    y2d = y.astype(jnp.int32).reshape(n, 1)

    xel, alpha, wd = _fused_loss_call(x.astype(jnp.float32), y2d,
                                      alpha_tensors, wd_tensors)

    mx = 2.0 * 8.0 * len(crn_modules)           # "max = max + 2 * 8.0" per CRN
    alpha_loss = jnp.abs(alpha / mx - 0.0)      # L1Loss on a 1-element tensor
    return xel, alpha_loss, wd


# ----------------------------------------------------------------------------
# Pure-JAX reference for verification.
# ----------------------------------------------------------------------------
def ref_forward(x, y, params):
    lse = jax.scipy.special.logsumexp(x.astype(jnp.float32), axis=-1)
    ce = jnp.mean(lse - x[jnp.arange(x.shape[0]), y])
    alpha = sum(jnp.sum(jnp.abs(m["crnWeights"])) for m in params["crn"])
    mx = 16.0 * len(params["crn"])
    alpha_loss = jnp.abs(alpha / mx)
    wd = sum(jnp.sum(m["weight"] ** 2) for m in params["crn"])
    wd = wd + sum(jnp.sum(w ** 2) for w in params["other_weights"])
    return ce, alpha_loss, wd


if __name__ == "__main__":
    key = jax.random.PRNGKey(0)
    k1, k2, k3, k4, k5 = jax.random.split(key, 5)

    # Logits / labels (CrossEntropyLoss inputs).
    N, C = 8, 10
    x = jax.random.normal(k1, (N, C), jnp.float32)
    y = jax.random.randint(k2, (N,), 0, C)

    # Synthetic "model" parameters matching the CRN / Linear / BatchNorm2d shapes.
    # CRN.__init__: conv weight (out,in,3,3); crnWeights (out,in,1,1) init to ones.
    crn1 = {
        "weight": 0.1 * jax.random.normal(k3, (8, 4, 3, 3), jnp.float32),
        "crnWeights": jnp.ones((8, 4, 1, 1), jnp.float32),
    }
    crn2 = {
        "weight": 0.1 * jax.random.normal(k4, (8, 8, 3, 3), jnp.float32),
        "crnWeights": jnp.ones((8, 8, 1, 1), jnp.float32),
    }
    linear_w = 0.1 * jax.random.normal(k5, (C, 32), jnp.float32)   # nn.Linear(32, C).weight
    bn_w = jnp.ones((8,), jnp.float32)                             # nn.BatchNorm2d(8).weight
    params = {"crn": [crn1, crn2], "other_weights": [linear_w, bn_w]}

    xel, alpha_loss, wd = crn_loss_forward(x, y, params, reg_strength=1e-4)
    jax.block_until_ready((xel, alpha_loss, wd))

    rxel, ralpha, rwd = ref_forward(x, y, params)
    assert np.allclose(np.asarray(xel), np.asarray(rxel), rtol=1e-5, atol=1e-5)
    assert np.allclose(np.asarray(alpha_loss), np.asarray(ralpha), rtol=1e-5, atol=1e-5)
    assert np.allclose(np.asarray(wd), np.asarray(rwd), rtol=1e-4, atol=1e-4)

    print("KERNEL_OK")
</pallas_src>

<mosaic_0001>
module attributes {stable_mosaic.version = 11 : i64} {
  func.func @kernel(%arg0: i32, %arg1: memref<8x10xf32, #tpu.memory_space<vmem>>, %arg2: memref<8x1xi32, #tpu.memory_space<vmem>>, %arg3: memref<1x32xf32, #tpu.memory_space<vmem>>, %arg4: memref<1x64xf32, #tpu.memory_space<vmem>>, %arg5: memref<1x288xf32, #tpu.memory_space<vmem>>, %arg6: memref<1x576xf32, #tpu.memory_space<vmem>>, %arg7: memref<1x320xf32, #tpu.memory_space<vmem>>, %arg8: memref<1x8xf32, #tpu.memory_space<vmem>>, %arg9: memref<1x128xf32, #tpu.memory_space<vmem>>) attributes {dimension_semantics = [#tpu.dimension_semantics<arbitrary>], iteration_bounds = array<i64: 1>, scalar_prefetch = 0 : i64, scratch_operands = 0 : i64, tpu.core_type = #tpu.core_type<tc>, window_params = [{pipeline_mode = #tpu.pipeline_mode<synchronous>, transform_indices = @transform_0, window_bounds = array<i64: 8, 10>}, {pipeline_mode = #tpu.pipeline_mode<synchronous>, transform_indices = @transform_1, window_bounds = array<i64: 8, 1>}, {pipeline_mode = #tpu.pipeline_mode<synchronous>, transform_indices = @transform_2, window_bounds = array<i64: 1, 32>}, {pipeline_mode = #tpu.pipeline_mode<synchronous>, transform_indices = @transform_3, window_bounds = array<i64: 1, 64>}, {pipeline_mode = #tpu.pipeline_mode<synchronous>, transform_indices = @transform_4, window_bounds = array<i64: 1, 288>}, {pipeline_mode = #tpu.pipeline_mode<synchronous>, transform_indices = @transform_5, window_bounds = array<i64: 1, 576>}, {pipeline_mode = #tpu.pipeline_mode<synchronous>, transform_indices = @transform_6, window_bounds = array<i64: 1, 320>}, {pipeline_mode = #tpu.pipeline_mode<synchronous>, transform_indices = @transform_7, window_bounds = array<i64: 1, 8>}, {pipeline_mode = #tpu.pipeline_mode<synchronous>, transform_indices = @transform_8, window_bounds = array<i64: 1, 128>}]} {
    %c0 = arith.constant 0 : index
    %c0_0 = arith.constant 0 : index
    %0 = vector.load %arg1[%c0, %c0_0] : memref<8x10xf32, #tpu.memory_space<vmem>>, vector<8x10xf32>
    %c0_1 = arith.constant 0 : index
    %c0_2 = arith.constant 0 : index
    %1 = vector.load %arg2[%c0_1, %c0_2] : memref<8x1xi32, #tpu.memory_space<vmem>>, vector<8x1xi32>
    %2 = tpu.iota {dimensions = array<i32: 1>} : vector<8x10xi32>
    %3 = vector.broadcast %1 : vector<8x1xi32> to vector<8x10xi32>
    %4 = arith.cmpi eq, %2, %3 : vector<8x10xi32>
    %cst = arith.constant 0.000000e+00 : f32
    %5 = vector.broadcast %cst : f32 to vector<8x10xf32>
    %6 = arith.select %4, %0, %5 : vector<8x10xi1>, vector<8x10xf32>
    %cst_3 = arith.constant dense<0.000000e+00> : vector<8xf32>
    %7 = vector.multi_reduction <add>, %6, %cst_3 [1] : vector<8x10xf32> to vector<8xf32>
    %8 = vector.shape_cast %7 : vector<8xf32> to vector<8x1xf32>
    %cst_4 = arith.constant dense<0xFF800000> : vector<8xf32>
    %9 = vector.multi_reduction <maximumf>, %0, %cst_4 [1] : vector<8x10xf32> to vector<8xf32>
    %10 = vector.shape_cast %9 : vector<8xf32> to vector<8x1xf32>
    %11 = vector.broadcast %10 : vector<8x1xf32> to vector<8x10xf32>
    %12 = arith.subf %0, %11 : vector<8x10xf32>
    %13 = math.exp %12 : vector<8x10xf32>
    %cst_5 = arith.constant dense<0.000000e+00> : vector<8xf32>
    %14 = vector.multi_reduction <add>, %13, %cst_5 [1] : vector<8x10xf32> to vector<8xf32>
    %15 = vector.shape_cast %14 : vector<8xf32> to vector<8x1xf32>
    %16 = math.log %15 : vector<8x1xf32>
    %17 = arith.addf %10, %16 : vector<8x1xf32>
    %18 = arith.subf %17, %8 : vector<8x1xf32>
    %cst_6 = arith.constant dense<0.000000e+00> : vector<1xf32>
    %19 = vector.multi_reduction <add>, %18, %cst_6 [0] : vector<8x1xf32> to vector<1xf32>
    %20 = vector.shape_cast %19 : vector<1xf32> to vector<1x1xf32>
    %cst_7 = arith.constant 1.250000e-01 : f32
    %21 = vector.broadcast %cst_7 : f32 to vector<1x1xf32>
    %22 = arith.mulf %20, %21 : vector<1x1xf32>
    %cst_8 = arith.constant 0.000000e+00 : f32
    %23 = vector.broadcast %cst_8 : f32 to vector<1x1xf32>
    %c0_9 = arith.constant 0 : index
    %c0_10 = arith.constant 0 : index
    %24 = vector.load %arg3[%c0_9, %c0_10] : memref<1x32xf32, #tpu.memory_space<vmem>>, vector<1x32xf32>
    %25 = math.absf %24 : vector<1x32xf32>
    %cst_11 = arith.constant dense<0.000000e+00> : vector<1xf32>
    %26 = vector.multi_reduction <add>, %25, %cst_11 [1] : vector<1x32xf32> to vector<1xf32>
    %27 = vector.shape_cast %26 : vector<1xf32> to vector<1x1xf32>
    %cst_12 = arith.constant dense<0.000000e+00> : vector<1xf32>
    %28 = vector.multi_reduction <add>, %27, %cst_12 [0] : vector<1x1xf32> to vector<1xf32>
    %29 = vector.shape_cast %28 : vector<1xf32> to vector<1x1xf32>
    %30 = arith.addf %23, %29 : vector<1x1xf32>
    %c0_13 = arith.constant 0 : index
    %c0_14 = arith.constant 0 : index
    %31 = vector.load %arg4[%c0_13, %c0_14] : memref<1x64xf32, #tpu.memory_space<vmem>>, vector<1x64xf32>
    %32 = math.absf %31 : vector<1x64xf32>
    %cst_15 = arith.constant dense<0.000000e+00> : vector<1xf32>
    %33 = vector.multi_reduction <add>, %32, %cst_15 [1] : vector<1x64xf32> to vector<1xf32>
    %34 = vector.shape_cast %33 : vector<1xf32> to vector<1x1xf32>
    %cst_16 = arith.constant dense<0.000000e+00> : vector<1xf32>
    %35 = vector.multi_reduction <add>, %34, %cst_16 [0] : vector<1x1xf32> to vector<1xf32>
    %36 = vector.shape_cast %35 : vector<1xf32> to vector<1x1xf32>
    %37 = arith.addf %30, %36 : vector<1x1xf32>
    %cst_17 = arith.constant 0.000000e+00 : f32
    %38 = vector.broadcast %cst_17 : f32 to vector<1x1xf32>
    %c0_18 = arith.constant 0 : index
    %c0_19 = arith.constant 0 : index
    %39 = vector.load %arg5[%c0_18, %c0_19] : memref<1x288xf32, #tpu.memory_space<vmem>>, vector<1x288xf32>
    %40 = arith.mulf %39, %39 : vector<1x288xf32>
    %cst_20 = arith.constant dense<0.000000e+00> : vector<1xf32>
    %41 = vector.multi_reduction <add>, %40, %cst_20 [1] : vector<1x288xf32> to vector<1xf32>
    %42 = vector.shape_cast %41 : vector<1xf32> to vector<1x1xf32>
    %cst_21 = arith.constant dense<0.000000e+00> : vector<1xf32>
    %43 = vector.multi_reduction <add>, %42, %cst_21 [0] : vector<1x1xf32> to vector<1xf32>
    %44 = vector.shape_cast %43 : vector<1xf32> to vector<1x1xf32>
    %45 = arith.addf %38, %44 : vector<1x1xf32>
    %c0_22 = arith.constant 0 : index
    %c0_23 = arith.constant 0 : index
    %46 = vector.load %arg6[%c0_22, %c0_23] : memref<1x576xf32, #tpu.memory_space<vmem>>, vector<1x576xf32>
    %47 = arith.mulf %46, %46 : vector<1x576xf32>
    %cst_24 = arith.constant dense<0.000000e+00> : vector<1xf32>
    %48 = vector.multi_reduction <add>, %47, %cst_24 [1] : vector<1x576xf32> to vector<1xf32>
    %49 = vector.shape_cast %48 : vector<1xf32> to vector<1x1xf32>
    %cst_25 = arith.constant dense<0.000000e+00> : vector<1xf32>
    %50 = vector.multi_reduction <add>, %49, %cst_25 [0] : vector<1x1xf32> to vector<1xf32>
    %51 = vector.shape_cast %50 : vector<1xf32> to vector<1x1xf32>
    %52 = arith.addf %45, %51 : vector<1x1xf32>
    %c0_26 = arith.constant 0 : index
    %c0_27 = arith.constant 0 : index
    %53 = vector.load %arg7[%c0_26, %c0_27] : memref<1x320xf32, #tpu.memory_space<vmem>>, vector<1x320xf32>
    %54 = arith.mulf %53, %53 : vector<1x320xf32>
    %cst_28 = arith.constant dense<0.000000e+00> : vector<1xf32>
    %55 = vector.multi_reduction <add>, %54, %cst_28 [1] : vector<1x320xf32> to vector<1xf32>
    %56 = vector.shape_cast %55 : vector<1xf32> to vector<1x1xf32>
    %cst_29 = arith.constant dense<0.000000e+00> : vector<1xf32>
    %57 = vector.multi_reduction <add>, %56, %cst_29 [0] : vector<1x1xf32> to vector<1xf32>
    %58 = vector.shape_cast %57 : vector<1xf32> to vector<1x1xf32>
    %59 = arith.addf %52, %58 : vector<1x1xf32>
    %c0_30 = arith.constant 0 : index
    %c0_31 = arith.constant 0 : index
    %60 = vector.load %arg8[%c0_30, %c0_31] : memref<1x8xf32, #tpu.memory_space<vmem>>, vector<1x8xf32>
    %61 = arith.mulf %60, %60 : vector<1x8xf32>
    %cst_32 = arith.constant dense<0.000000e+00> : vector<1xf32>
    %62 = vector.multi_reduction <add>, %61, %cst_32 [1] : vector<1x8xf32> to vector<1xf32>
    %63 = vector.shape_cast %62 : vector<1xf32> to vector<1x1xf32>
    %cst_33 = arith.constant dense<0.000000e+00> : vector<1xf32>
    %64 = vector.multi_reduction <add>, %63, %cst_33 [0] : vector<1x1xf32> to vector<1xf32>
    %65 = vector.shape_cast %64 : vector<1xf32> to vector<1x1xf32>
    %66 = arith.addf %59, %65 : vector<1x1xf32>
    %67 = tpu.iota {dimensions = array<i32: 1>} : vector<1x128xi32>
    %c0_i32 = arith.constant 0 : i32
    %68 = vector.broadcast %c0_i32 : i32 to vector<1x128xi32>
    %69 = arith.cmpi eq, %67, %68 : vector<1x128xi32>
    %cst_34 = arith.constant 0.000000e+00 : f32
    %70 = vector.shape_cast %22 : vector<1x1xf32> to vector<1x1xf32>
    %71 = vector.broadcast %70 : vector<1x1xf32> to vector<1x128xf32>
    %72 = vector.broadcast %cst_34 : f32 to vector<1x128xf32>
    %73 = arith.select %69, %71, %72 : vector<1x128xi1>, vector<1x128xf32>
    %c1_i32 = arith.constant 1 : i32
    %74 = vector.broadcast %c1_i32 : i32 to vector<1x128xi32>
    %75 = arith.cmpi eq, %67, %74 : vector<1x128xi32>
    %cst_35 = arith.constant 0.000000e+00 : f32
    %76 = vector.shape_cast %37 : vector<1x1xf32> to vector<1x1xf32>
    %77 = vector.broadcast %76 : vector<1x1xf32> to vector<1x128xf32>
    %78 = vector.broadcast %cst_35 : f32 to vector<1x128xf32>
    %79 = arith.select %75, %77, %78 : vector<1x128xi1>, vector<1x128xf32>
    %80 = arith.addf %73, %79 : vector<1x128xf32>
    %c2_i32 = arith.constant 2 : i32
    %81 = vector.broadcast %c2_i32 : i32 to vector<1x128xi32>
    %82 = arith.cmpi eq, %67, %81 : vector<1x128xi32>
    %cst_36 = arith.constant 0.000000e+00 : f32
    %83 = vector.shape_cast %66 : vector<1x1xf32> to vector<1x1xf32>
    %84 = vector.broadcast %83 : vector<1x1xf32> to vector<1x128xf32>
    %85 = vector.broadcast %cst_36 : f32 to vector<1x128xf32>
    %86 = arith.select %82, %84, %85 : vector<1x128xi1>, vector<1x128xf32>
    %87 = arith.addf %80, %86 : vector<1x128xf32>
    %c0_37 = arith.constant 0 : index
    %c0_38 = arith.constant 0 : index
    %88 = vector.load %arg9[%c0_37, %c0_38] : memref<1x128xf32, #tpu.memory_space<vmem>>, vector<1x128xf32>
    tpu.vector_store %arg9[%c0_37, %c0_38], %87 {strides = array<i32>} : memref<1x128xf32, #tpu.memory_space<vmem>>, vector<1x128xf32>,
    return
  }
  func.func @transform_0(%arg0: i32) -> (i32, i32) {
    %c0_i32 = arith.constant 0 : i32
    %c0_i32_0 = arith.constant 0 : i32
    %c0_i32_1 = arith.constant 0 : i32
    return %c0_i32, %c0_i32_0 : i32, i32
  }
  func.func @transform_1(%arg0: i32) -> (i32, i32) {
    %c0_i32 = arith.constant 0 : i32
    %c0_i32_0 = arith.constant 0 : i32
    %c0_i32_1 = arith.constant 0 : i32
    return %c0_i32, %c0_i32_0 : i32, i32
  }
  func.func @transform_2(%arg0: i32) -> (i32, i32) {
    %c0_i32 = arith.constant 0 : i32
    %c0_i32_0 = arith.constant 0 : i32
    %c0_i32_1 = arith.constant 0 : i32
    return %c0_i32, %c0_i32_0 : i32, i32
  }
  func.func @transform_3(%arg0: i32) -> (i32, i32) {
    %c0_i32 = arith.constant 0 : i32
    %c0_i32_0 = arith.constant 0 : i32
    %c0_i32_1 = arith.constant 0 : i32
    return %c0_i32, %c0_i32_0 : i32, i32
  }
  func.func @transform_4(%arg0: i32) -> (i32, i32) {
    %c0_i32 = arith.constant 0 : i32
    %c0_i32_0 = arith.constant 0 : i32
    %c0_i32_1 = arith.constant 0 : i32
    return %c0_i32, %c0_i32_0 : i32, i32
  }
  func.func @transform_5(%arg0: i32) -> (i32, i32) {
    %c0_i32 = arith.constant 0 : i32
    %c0_i32_0 = arith.constant 0 : i32
    %c0_i32_1 = arith.constant 0 : i32
    return %c0_i32, %c0_i32_0 : i32, i32
  }
  func.func @transform_6(%arg0: i32) -> (i32, i32) {
    %c0_i32 = arith.constant 0 : i32
    %c0_i32_0 = arith.constant 0 : i32
    %c0_i32_1 = arith.constant 0 : i32
    return %c0_i32, %c0_i32_0 : i32, i32
  }
  func.func @transform_7(%arg0: i32) -> (i32, i32) {
    %c0_i32 = arith.constant 0 : i32
    %c0_i32_0 = arith.constant 0 : i32
    %c0_i32_1 = arith.constant 0 : i32
    return %c0_i32, %c0_i32_0 : i32, i32
  }
  func.func @transform_8(%arg0: i32) -> (i32, i32) {
    %c0_i32 = arith.constant 0 : i32
    %c0_i32_0 = arith.constant 0 : i32
    %c0_i32_1 = arith.constant 0 : i32
    return %c0_i32, %c0_i32_0 : i32, i32
  }
}

</mosaic_0001>

<bundles_post_ra>
// kernel: tpu_custom_call.1
= control target key start
LH: loop header
LB: loop body
LE: loop exit
PB: predicated region body
PF: predicated region fallthrough
CT: control target
= control target key end

     0   :  { %13 = vsyncpa [#allocation3], 0  ;;  %s394_s0 = inlined_call_operand.vmem [shape: f32[8,10], index: 0, kind: input, shape index: {}]   ;;  %s395_s1 = inlined_call_operand.vmem [shape: s32[8,1], index: 1, kind: input, shape index: {}]   ;;  %s396_s2 = inlined_call_operand.hbm [shape: f32[1,32], index: 2, kind: input, shape index: {}]   ;;  %s397_s3 = inlined_call_operand.vmem [shape: f32[1,64], index: 3, kind: input, shape index: {}]   ;;  %s398_s4 = inlined_call_operand.vmem [shape: f32[1,288], index: 4, kind: input, shape index: {}]   ;;  %s399_s5 = inlined_call_operand.vmem [shape: f32[1,576], index: 5, kind: input, shape index: {}]   ;;  %s400_s6 = inlined_call_operand.vmem [shape: f32[1,320], index: 6, kind: input, shape index: {}]   ;;  %s401_s7 = inlined_call_operand.vmem [shape: f32[1,8], index: 7, kind: input, shape index: {}]   ;;  %s402_s8 = inlined_call_operand.hbm [shape: f32[1,128], index: 8, kind: output, shape index: {}]  }
   0x1   :  { %14 = vsyncpa [#allocation4], 0  ;;  %s275_s27 = smov [#allocation2]   ;;  %s227_s9 = scalar_lea.hbm %s396_s2, 16 }
   0x2   :  { %s25_s28 = sshll.u32 %s275_s27, 4  ;;  %p228_p0 = scmp.ne.s32.totalorder %s396_s2, %s227_s9  ;;  %s26_s28 = int_to_ptr.vmem [resolvable:$true] %s25_s28 }
   0x3   :  { %p231_p1 = scmp.lt.u32.totalorder %s227_s9, %s396_s2 }
   0x5   :  { %p233_p2 = pnand %p231_p1, %p228_p0 }
   0x7   :  { %236 = shalt.err (!%p233_p2)
}
   0x8   :  { %s237_s14 = scalar_lea.vmem %s26_s28, 16  ;;  %s241_s15 = scalar_lea.vmem %s26_s28, 32 }
   0x9   :  { %p238_p3 = scmp.ne.s32.totalorder %s26_s28, %s237_s14  ;;  %p242_p4 = scmp.lt.s32.totalorder %s26_s28, %s26_s28 }
   0xa   :  { %p243_p5 = scmp.lt.s32.totalorder %s241_s15, %s237_s14 }
   0xc   :  { %p244_p6 = por %p243_p5, %p242_p4 }
   0xe   :  { %p245_p7 = pnand %p244_p6, %p238_p3 }
  0x10   :  { %248 = shalt.err (!%p245_p7)
}
  0x11   :  { %28 = dma.hbm_to_vmem [thread:$0]  %s396_s2, 16, %s26_s28, [#allocation3]  }
  0x12   :  { %271 = dma.done.wait [#allocation3], 16  }
  0x13   :  { %272 = vsyncadd [#allocation3], 4294967280  ;;  %v276_v0 = vmov 0   ;;  %vm51_vm0 = vcmask 80896   ;;  %v42_v1 = vld [vmem:[%s394_s0] sm:$0xff]  ;;  %v44_v4 = vlaneseq  ;;  %vm109_vm1 = vcmask 1040384  }
  0x14   :  { %222 = vset.pattern.permute.xlu0 %v276_v0  ;;  %v55_v2 = vsel %vm51_vm0, %v42_v1, -inf  ;;  %v43_v3 = vld [vmem:[%s395_s1] sm:$0xff]  ;;  %vm77_vm3 = vcmask 253952   ;;  %vm85_vm4 = vcmask 516096   ;;  %vm189_vm5 = vcmask 57344  }
  0x15   :  { %56 = vmax.xlane.f32.xlu0 %v55_v2  ;;  %v95_v5 = vshrl.u32 %v44_v4, 7  ;;  %v119_v6 = vld [vmem:[%s399_s5] sm:$0x1f]  ;;  %v351_v18 = vand.u32 127, %v44_v4 }
  0x16   :  { %v91_v9 = vld [vmem:[%s398_s4] sm:$0x7]  ;;  %v120_v12 = vmul.f32 %v119_v6, %v119_v6 }
  0x17   :  { %v96_v10 = vsub.s32 0, %v95_v5  ;;  %v100_v11 = vsub.s32 1, %v95_v5  ;;  %v92_v14 = vmul.f32 %v91_v9, %v91_v9  ;;  %v104_v15 = vsub.s32 2, %v95_v5  ;;  %v160_v42 = vld [vmem:[%s400_s6] sm:$0x7] }
  0x18   :  { %v136_v23 = vsub.s32 3, %v95_v5  ;;  %v140_v31 = vsub.s32 4, %v95_v5  ;;  %v75_v46 = vld [vmem:[#allocation2] sm:$0x1]  ;;  %v161_v47 = vmul.f32 %v160_v42, %v160_v42  ;;  %vm195_vm6 = vcmp.eq.s32.totalorder %v351_v18, 0 }
  0x19   :  { %v125_v16 = vrot.slane %v120_v12, %v96_v10  ;;  %v129_v17 = vrot.slane %v120_v12, %v100_v11  ;;  %v97_v20 = vrot.slane %v92_v14, %v96_v10  ;;  %v101_v21 = vrot.slane %v92_v14, %v100_v11  ;;  %v83_v52 = vld [vmem:[%s397_s3] sm:$0x1]  ;;  %s277_s3 = smov [#allocation5]  }
  0x1a   :  { %v133_v22 = vrot.slane %v120_v12, %v104_v15  ;;  %v105_v26 = vrot.slane %v92_v14, %v104_v15  ;;  %v137_v30 = vrot.slane %v120_v12, %v136_v23  ;;  %v141_v40 = vrot.slane %v120_v12, %v140_v31  ;;  %v187_v61 = vld [vmem:[%s401_s7] sm:$0x1]  ;;  %s210_s7 = sshll.u32 %s277_s3, 4  ;;  %s211_s7 = int_to_ptr.vmem [resolvable:$true] %s210_s7 }
  0x1b   :  { %v147_v24 = vsel %vm109_vm1, %v125_v16, 0.0  ;;  %v148_v25 = vsel %vm109_vm1, %v129_v17, 0.0  ;;  %v110_v27 = vsel %vm109_vm1, %v97_v20, 0.0  ;;  %v111_v29 = vsel %vm109_vm1, %v101_v21, 0.0  ;;  %s249_s26 = scalar_lea.vmem %s211_s7, 16  ;;  %s253_s27 = scalar_lea.vmem %s211_s7, 32 }
  0x1c   :  { %v149_v28 = vadd.f32 %v148_v25, %v147_v24  ;;  %v150_v32 = vsel %vm109_vm1, %v133_v22, 0.0  ;;  %v112_v36 = vadd.f32 %v111_v29, %v110_v27  ;;  %v113_v39 = vsel %vm77_vm3, %v105_v26, 0.0  ;;  %p250_p8 = scmp.ne.s32.totalorder %s211_s7, %s249_s26  ;;  %p254_p9 = scmp.lt.s32.totalorder %s211_s7, %s211_s7 }
  0x1d   :  { %v152_v41 = vsel %vm109_vm1, %v137_v30, 0.0  ;;  %v154_v45 = vsel %vm85_vm4, %v141_v40, 0.0  ;;  %v76_v49 = vand.u32 2147483647, %v75_v46  ;;  %v166_v50 = vrot.slane %v161_v47, %v96_v10  ;;  %p255_p10 = scmp.lt.s32.totalorder %s253_s27, %s249_s26 }
  0x1e   :  { %v151_v37 = vadd.f32 %v150_v32, %v149_v28  ;;  %v114_v43 = vadd.f32 %v113_v39, %v112_v36  ;;  %v170_v51 = vrot.slane %v161_v47, %v100_v11  ;;  %v84_v54 = vand.u32 2147483647, %v83_v52 }
  0x1f   :  { %v78_v53 = vsel %vm77_vm3, %v76_v49, 0.0  ;;  %v174_v55 = vrot.slane %v161_v47, %v104_v15  ;;  %v178_v56 = vsel %vm109_vm1, %v166_v50, 0.0  ;;  %v188_v63 = vmul.f32 %v187_v61, %v187_v61  ;;  %p256_p11 = por %p255_p10, %p254_p9 }
  0x20   :  { %v153_v44 = vadd.f32 %v152_v41, %v151_v37  ;;  %v179_v57 = vsel %vm109_vm1, %v170_v51, 0.0  ;;  %v86_v59 = vsel %vm85_vm4, %v84_v54, 0.0  ;;  %vm197_vm7 = vcmp.eq.s32.totalorder %v351_v18, 1 }
  0x21   :  { %v180_v58 = vadd.f32 %v179_v57, %v178_v56  ;;  %v181_v60 = vsel %vm85_vm4, %v174_v55, 0.0  ;;  %v190_v0 = vsel %vm189_vm5, %v188_v63, 0.0  ;;  %vm200_vm8 = vcmp.eq.s32.totalorder %v351_v18, 2  ;;  %p257_p12 = pnand %p256_p11, %p250_p8 }
  0x22   :  { %v155_v48 = vadd.f32 %v154_v45, %v153_v44 }
  0x23   :  { %v182_v62 = vadd.f32 %v181_v60, %v180_v58 }
  0x2b   :  { %47 = vperm.xlu0 %222, %v43_v3  }
  0xa2   :  { %v345_v7 = vpop.xlane.xlu0 %56 }
  0xa3   :  { %v58_v8 = vsub.f32 %v42_v1, %v345_v7 }
  0xa5   :  { %v59_v13 = vmul.f32 1.442695, %v58_v8 }
  0xa7   :  { %223 = vpow2.f32 %v59_v13 }
  0xaa   :  { %v48_v19 = vpop.permute.xlu0 %47 }
  0xab   :  { %vm49_vm2 = vcmp.eq.s32.totalorder %v351_v18, %v48_v19 }
  0xac   :  { %v50_v34 = vsel %vm49_vm2, %v42_v1, 0.0 }
  0xad   :  { %v52_v38 = vsel %vm51_vm0, %v50_v34, 0.0 }
  0xb1   :  { %v224_v33 = vpop.eup %223 }
  0xb2   :  { %v61_v35 = vsel %vm51_vm0, %v224_v33, 0.0 }
  0xb3   :  { %62 = vadd.xlane.f32.xlu1 %v61_v35 }
  0xb7   :  { %53 = vadd.xlane.f32.xlu1 %v52_v38 }
  0xbb   :  { %115 = vadd.xlane.f32.xlu1 %v114_v43 }
  0xbf   :  { %156 = vadd.xlane.f32.xlu1 %v155_v48 }
  0xc3   :  { %79 = vadd.xlane.f32.xlu1 %v78_v53 }
  0xc7   :  { %87 = vadd.xlane.f32.xlu1 %v86_v59 }
  0xcb   :  { %183 = vadd.xlane.f32.xlu1 %v182_v62 }
  0xcf   :  { %191 = vadd.xlane.f32.xlu1 %v190_v0 }
 0x140   :  { %v63_v1 = vpop.xlane.xlu1 %62 }
 0x141   :  { %225 = vlog2.f32 %v63_v1 }
 0x144   :  { %v54_v2 = vpop.xlane.xlu1 %53 }
 0x148   :  { %v116_v3 = vpop.xlane.xlu1 %115 }
 0x14b   :  { %v226_v4 = vpop.eup %225 }
 0x14c   :  { %v65_v5 = vmul.f32 0.6931472, %v226_v4  ;;  %v157_v6 = vpop.xlane.xlu1 %156 }
 0x14d   :  { %v159_v19 = vadd.f32 %v157_v6, %v116_v3 }
 0x14e   :  { %v66_v8 = vadd.f32 %v65_v5, %v345_v7 }
 0x150   :  { %v67_v9 = vsub.f32 %v66_v8, %v54_v2  ;;  %v80_v10 = vpop.xlane.xlu1 %79 }
 0x152   :  { %v68_v11 = vrot.slane %v67_v9, 4 }
 0x154   :  { %v69_v12 = vadd.f32 %v68_v11, %v67_v9  ;;  %v88_v13 = vpop.xlane.xlu1 %87 }
 0x155   :  { %v90_v21 = vadd.f32 %v88_v13, %v80_v10 }
 0x156   :  { %v70_v14 = vrot.slane %v69_v12, 2 }
 0x157   :  { %v198_v26 = vsel %vm197_vm7, %v90_v21, 0.0 }
 0x158   :  { %v71_v15 = vadd.f32 %v70_v14, %v69_v12  ;;  %v184_v16 = vpop.xlane.xlu1 %183 }
 0x159   :  { %v186_v22 = vadd.f32 %v184_v16, %v159_v19 }
 0x15a   :  { %v72_v17 = vrot.slane %v71_v15, 1 }
 0x15c   :  { %v73_v20 = vadd.f32 %v72_v17, %v71_v15  ;;  %v192_v23 = vpop.xlane.xlu1 %191 }
 0x15d   :  { %v194_v7 = vadd.f32 %v192_v23, %v186_v22 }
 0x15e   :  { %v74_v24 = vmul.f32 0.125, %v73_v20 }
 0x15f   :  { %v201_v28 = vsel %vm200_vm8, %v194_v7, 0.0 }
 0x160   :  { %v196_v25 = vsel %vm195_vm6, %v74_v24, 0.0 }
 0x161   :  { %v199_v27 = vadd.f32 %v198_v26, %v196_v25 }
 0x163   :  { %v202_v29 = vadd.f32 %v201_v28, %v199_v27 }
 0x165   :  { %203 = vst [vmem:[#allocation5] sm:$0x1] %v202_v29 }
 0x166   :  { %260 = shalt.err (!%p257_p12)
}
 0x167   :  { %s261_s30 = scalar_lea.hbm %s402_s8, 16 }
 0x168   :  { %p262_p13 = scmp.ne.s32.totalorder %s402_s8, %s261_s30  ;;  %p265_p0 = scmp.lt.u32.totalorder %s261_s30, %s402_s8 }
 0x16a   :  { %p267_p1 = pnand %p265_p0, %p262_p13 }
 0x16c   :  { %270 = shalt.err (!%p267_p1)
}
 0x16d   :  { %213 = dma.vmem_to_hbm [thread:$0]  %s211_s7, 16, %s402_s8, [#allocation4]  }
 0x16e   :  { %273 = dma.done.wait [#allocation4], 16  }
 0x16f   :  { %274 = vsyncadd [#allocation4], 4294967280 }
 0x170   :  { %217 = vsyncpa [#allocation3], 1 }
 0x171   :  { %218 = vsyncpa [#allocation4], 1 }

</bundles_post_ra>
